<compile_context>
chip_gen: v7x
topology: tpu7x:2x2x1
jax: 0.10.0
libtpu: 0.0.40
codegen_flags: <defaults>
</compile_context>

<pallas_src>
import functools
import math

import jax
import jax.numpy as jnp
from jax.experimental import pallas as pl
from jax.experimental.pallas import tpu as pltpu

BN_EPS = 1e-5
LANE = 128
VMEM_LIMIT = 48 * 1024 * 1024  # leaves headroom on v7x (64 MiB physical / TC)


def _round_up(n, m):
    return ((n + m - 1) // m) * m


def _pick_batch_tile(B):
    """Largest 'nice' batch tile that divides B (falls back to the whole batch)."""
    for bt in (512, 256, 128, 64, 32, 16, 8):
        if bt <= B and B % bt == 0:
            return bt
    return B


def _sigmoid(h):
    # tanh routes to the EUP (transcendental) slot; avoids an f32 divide on VALU.
    return 0.5 * jnp.tanh(0.5 * h) + 0.5


# --------------------------------------------------------------------------- #
# Pass 1: BatchNorm batch statistics of the first linear output.
# --------------------------------------------------------------------------- #
def _bn_stats_kernel(x_ref, l_ref, w1x_ref, w1l_ref, b1_ref, sum_ref, sq_ref):
    @pl.when(pl.program_id(0) == 0)
    def _():
        sum_ref[...] = jnp.zeros_like(sum_ref)
        sq_ref[...] = jnp.zeros_like(sq_ref)

    h = (
        jnp.dot(x_ref[...], w1x_ref[...], preferred_element_type=jnp.float32)
        + jnp.dot(l_ref[...], w1l_ref[...], preferred_element_type=jnp.float32)
        + b1_ref[...]
    )
    sum_ref[...] += jnp.sum(h, axis=0, keepdims=True)
    sq_ref[...] += jnp.sum(h * h, axis=0, keepdims=True)


# --------------------------------------------------------------------------- #
# Pass 2: full encoder on one batch tile (BN stats pre-folded into scale/shift).
# --------------------------------------------------------------------------- #
def _encoder_kernel(n_hidden, *refs):
    # inputs : x, l, w1x, w1l, b1, scale, shift, (w_h, b_h)*n_hidden, w_head, b_head
    # outputs: out_ref  -- fused [mean | logvar | zero-pad] slab, (bt, 128)
    n_in = 7 + 2 * n_hidden + 2
    it = iter(refs[:n_in])
    x_ref, l_ref = next(it), next(it)
    w1x_ref, w1l_ref, b1_ref = next(it), next(it), next(it)
    scale_ref, shift_ref = next(it), next(it)
    hidden_wb = [(next(it), next(it)) for _ in range(n_hidden)]
    wh_ref, bh_ref = next(it), next(it)
    out_ref = refs[n_in]

    # First linear (x and l consumed separately: no HBM concat in the wrapper).
    h = (
        jnp.dot(x_ref[...], w1x_ref[...], preferred_element_type=jnp.float32)
        + jnp.dot(l_ref[...], w1l_ref[...], preferred_element_type=jnp.float32)
        + b1_ref[...]
    )
    # BatchNorm1d (training-mode batch stats), folded to one scale/shift.
    h = h * scale_ref[...] + shift_ref[...]
    h = _sigmoid(h)

    # Remaining hidden layers (Python-unrolled; biases added per layer).
    for w_ref, b_ref in hidden_wb:
        h = jnp.dot(h, w_ref[...], preferred_element_type=jnp.float32) + b_ref[...]
        h = _sigmoid(h)

    # Fused mean/logvar head: single MXU push, single lane-dense store.
    out_ref[...] = (
        jnp.dot(h, wh_ref[...], preferred_element_type=jnp.float32) + bh_ref[...]
    )


# --------------------------------------------------------------------------- #
# Wrapper
# --------------------------------------------------------------------------- #
def encoder_forward(x, l, packed, inner_dim, hidden_layers=2):
    """x: (B, dx), l: (B, dl). Returns (mean, logvar), each (B, inner_dim)."""
    x = x.astype(jnp.float32)
    l = l.astype(jnp.float32)
    B, dx = x.shape
    dl = l.shape[1]
    Hp = packed["b1"].shape[1]      # padded hidden width  (multiple of 128)
    Pp = packed["b_head"].shape[1]  # padded fused-head width (multiple of 128)
    n_hidden = hidden_layers - 1

    bt = _pick_batch_tile(B)
    n_bt = B // bt

    const = lambda shape: pl.BlockSpec(shape, lambda i: (0, 0))
    row = lambda shape: pl.BlockSpec(shape, lambda i: (i, 0))

    # ---- Pass 1: BN batch statistics (accumulated across batch tiles) ------
    bsum, bsq = pl.pallas_call(
        _bn_stats_kernel,
        grid=(n_bt,),
        in_specs=[
            row((bt, dx)), row((bt, dl)),
            const((dx, Hp)), const((dl, Hp)), const((1, Hp)),
        ],
        out_specs=(const((1, Hp)), const((1, Hp))),
        out_shape=(
            jax.ShapeDtypeStruct((1, Hp), jnp.float32),
            jax.ShapeDtypeStruct((1, Hp), jnp.float32),
        ),
        compiler_params=pltpu.CompilerParams(
            dimension_semantics=("arbitrary",), vmem_limit_bytes=VMEM_LIMIT),
    )(x, l, packed["w1x"], packed["w1l"], packed["b1"])

    # Tiny (1, Hp) glue: fold BN (batch mean, biased var, eps, gamma, beta)
    # into a single scale/shift used by the main kernel.
    bn_mean = bsum / B
    bn_var = jnp.maximum(bsq / B - bn_mean * bn_mean, 0.0)
    scale = packed["gamma"] * jax.lax.rsqrt(bn_var + BN_EPS)
    shift = packed["beta"] - bn_mean * scale

    # ---- Pass 2: full encoder, tiled over the batch ("parallel") -----------
    inputs = [x, l, packed["w1x"], packed["w1l"], packed["b1"], scale, shift]
    in_specs = [
        row((bt, dx)), row((bt, dl)),
        const((dx, Hp)), const((dl, Hp)), const((1, Hp)),
        const((1, Hp)), const((1, Hp)),
    ]
    for i in range(n_hidden):
        inputs += [packed[f"w_h{i}"], packed[f"b_h{i}"]]
        in_specs += [const((Hp, Hp)), const((1, Hp))]
    inputs += [packed["w_head"], packed["b_head"]]
    in_specs += [const((Hp, Pp)), const((1, Pp))]

    out = pl.pallas_call(
        functools.partial(_encoder_kernel, n_hidden),
        grid=(n_bt,),
        in_specs=in_specs,
        out_specs=row((bt, Pp)),
        out_shape=jax.ShapeDtypeStruct((B, Pp), jnp.float32),
        compiler_params=pltpu.CompilerParams(
            dimension_semantics=("parallel",), vmem_limit_bytes=VMEM_LIMIT),
    )(*inputs)

    mean_out = out[:, :inner_dim]
    logvar_out = out[:, inner_dim:2 * inner_dim]
    return mean_out, logvar_out


# --------------------------------------------------------------------------- #
# Parameter handling
# --------------------------------------------------------------------------- #
def init_params(key, input_dim, hidden_dim, inner_dim, hidden_layers=2):
    """Logical params mimicking PyTorch Linear default init, stored as (in, out)."""
    def linear(k, fan_in, fan_out):
        k1, k2 = jax.random.split(k)
        bound = 1.0 / math.sqrt(fan_in)
        w = jax.random.uniform(k1, (fan_in, fan_out), jnp.float32, -bound, bound)
        b = jax.random.uniform(k2, (fan_out,), jnp.float32, -bound, bound)
        return w, b

    params = {}
    keys = jax.random.split(key, hidden_layers + 3)
    params["w1"], params["b1"] = linear(keys[0], input_dim, hidden_dim)
    params["gamma"] = jnp.ones((hidden_dim,), jnp.float32)
    params["beta"] = jnp.zeros((hidden_dim,), jnp.float32)
    for i in range(hidden_layers - 1):
        params[f"w_h{i}"], params[f"b_h{i}"] = linear(keys[1 + i], hidden_dim, hidden_dim)
    params["w_mean"], params["b_mean"] = linear(keys[hidden_layers], hidden_dim, inner_dim)
    params["w_logvar"], params["b_logvar"] = linear(keys[hidden_layers + 1], hidden_dim, inner_dim)
    return params


def pack_params(p, dx, hidden_dim, inner_dim, hidden_layers=2):
    """Pad all feature dims to 128 lanes, split w1 by input (x | l), fuse heads.

    Padded rows/cols are zero so padded lanes never leak into real outputs.
    """
    Hp = _round_up(hidden_dim, LANE)
    Pp = _round_up(2 * inner_dim, LANE)

    def pad2(a, rows, cols):
        a = jnp.asarray(a, jnp.float32)
        if a.ndim == 1:
            a = a.reshape(1, -1)
        out = jnp.zeros((rows, cols), jnp.float32)
        return out.at[: a.shape[0], : a.shape[1]].set(a)

    packed = {
        "w1x": pad2(p["w1"][:dx], dx, Hp),
        "w1l": pad2(p["w1"][dx:], p["w1"].shape[0] - dx, Hp),
        "b1": pad2(p["b1"], 1, Hp),
        "gamma": pad2(p["gamma"], 1, Hp),
        "beta": pad2(p["beta"], 1, Hp),
    }
    for i in range(hidden_layers - 1):
        packed[f"w_h{i}"] = pad2(p[f"w_h{i}"], Hp, Hp)
        packed[f"b_h{i}"] = pad2(p[f"b_h{i}"], 1, Hp)
    w_head = jnp.concatenate([p["w_mean"], p["w_logvar"]], axis=1)
    b_head = jnp.concatenate(
        [p["b_mean"].reshape(1, -1), p["b_logvar"].reshape(1, -1)], axis=1)
    packed["w_head"] = pad2(w_head, Hp, Pp)
    packed["b_head"] = pad2(b_head, 1, Pp)
    return packed


def _reference_forward(x, l, params, hidden_layers=2):
    """Pure-JAX reference for sanity checking (matches PyTorch training-mode fwd)."""
    h = jnp.concatenate([x, l], axis=1) @ params["w1"] + params["b1"]
    mu = jnp.mean(h, axis=0, keepdims=True)
    var = jnp.mean((h - mu) ** 2, axis=0, keepdims=True)
    h = (h - mu) / jnp.sqrt(var + BN_EPS) * params["gamma"] + params["beta"]
    h = jax.nn.sigmoid(h)
    for i in range(hidden_layers - 1):
        h = jax.nn.sigmoid(h @ params[f"w_h{i}"] + params[f"b_h{i}"])
    return (h @ params["w_mean"] + params["b_mean"],
            h @ params["w_logvar"] + params["b_logvar"])


if __name__ == "__main__":
    # Small shapes consistent with the module:
    #   x: (B, 24), l: (B, 8)  =>  input_dim = 32, hidden_dim = 32, inner_dim = 16
    B, dx, dl = 8, 24, 8
    input_dim, hidden_dim, inner_dim, hidden_layers = dx + dl, 32, 16, 2

    key = jax.random.PRNGKey(0)
    kx, kl, kp = jax.random.split(key, 3)
    x = jax.random.normal(kx, (B, dx), jnp.float32)
    l = jax.random.normal(kl, (B, dl), jnp.float32)

    params = init_params(kp, input_dim, hidden_dim, inner_dim, hidden_layers)
    packed = pack_params(params, dx, hidden_dim, inner_dim, hidden_layers)

    mean, logvar = encoder_forward(x, l, packed, inner_dim, hidden_layers)
    jax.block_until_ready((mean, logvar))

    ref_mean, ref_logvar = _reference_forward(x, l, params, hidden_layers)
    assert mean.shape == (B, inner_dim) and logvar.shape == (B, inner_dim)
    assert jnp.allclose(mean, ref_mean, atol=1e-4, rtol=1e-4), \
        float(jnp.max(jnp.abs(mean - ref_mean)))
    assert jnp.allclose(logvar, ref_logvar, atol=1e-4, rtol=1e-4), \
        float(jnp.max(jnp.abs(logvar - ref_logvar)))

    # TODO(synk): optionally cast matmul inputs to bf16 on v6e/v7x and stream
    # per-layer weights via pl.ANY + manual DMA once hidden_dim is large enough
    # to pressure the 64 MiB v7x VMEM budget.
    print("KERNEL_OK")
</pallas_src>

<mosaic_0001>
module attributes {stable_mosaic.version = 11 : i64} {
  func.func @_bn_stats_kernel(%arg0: i32, %arg1: memref<8x24xf32, #tpu.memory_space<vmem>>, %arg2: memref<8x8xf32, #tpu.memory_space<vmem>>, %arg3: memref<24x128xf32, #tpu.memory_space<vmem>>, %arg4: memref<8x128xf32, #tpu.memory_space<vmem>>, %arg5: memref<1x128xf32, #tpu.memory_space<vmem>>, %arg6: memref<1x128xf32, #tpu.memory_space<vmem>>, %arg7: memref<1x128xf32, #tpu.memory_space<vmem>>) attributes {dimension_semantics = [#tpu.dimension_semantics<arbitrary>], iteration_bounds = array<i64: 1>, scalar_prefetch = 0 : i64, scratch_operands = 0 : i64, tpu.core_type = #tpu.core_type<tc>, window_params = [{transform_indices = @transform_0, window_bounds = array<i64: 8, 24>}, {transform_indices = @transform_1, window_bounds = array<i64: 8, 8>}, {pipeline_mode = #tpu.pipeline_mode<synchronous>, transform_indices = @transform_2, window_bounds = array<i64: 24, 128>}, {pipeline_mode = #tpu.pipeline_mode<synchronous>, transform_indices = @transform_3, window_bounds = array<i64: 8, 128>}, {pipeline_mode = #tpu.pipeline_mode<synchronous>, transform_indices = @transform_4, window_bounds = array<i64: 1, 128>}, {pipeline_mode = #tpu.pipeline_mode<synchronous>, transform_indices = @transform_5, window_bounds = array<i64: 1, 128>}, {pipeline_mode = #tpu.pipeline_mode<synchronous>, transform_indices = @transform_6, window_bounds = array<i64: 1, 128>}]} {
    %c0_i32 = arith.constant 0 : i32
    %0 = arith.cmpi eq, %arg0, %c0_i32 : i32
    %1 = arith.extui %0 : i1 to i32
    %c0_i32_0 = arith.constant 0 : i32
    %2 = arith.cmpi ne, %1, %c0_i32_0 : i32
    scf.if %2 {
      %cst_21 = arith.constant 0.000000e+00 : f32
      %24 = vector.broadcast %cst_21 : f32 to vector<1x128xf32>
      %c0_22 = arith.constant 0 : index
      %c0_23 = arith.constant 0 : index
      %25 = vector.load %arg6[%c0_22, %c0_23] : memref<1x128xf32, #tpu.memory_space<vmem>>, vector<1x128xf32>
      tpu.vector_store %arg6[%c0_22, %c0_23], %24 {strides = array<i32>} : memref<1x128xf32, #tpu.memory_space<vmem>>, vector<1x128xf32>,
      %cst_24 = arith.constant 0.000000e+00 : f32
      %26 = vector.broadcast %cst_24 : f32 to vector<1x128xf32>
      %c0_25 = arith.constant 0 : index
      %c0_26 = arith.constant 0 : index
      %27 = vector.load %arg7[%c0_25, %c0_26] : memref<1x128xf32, #tpu.memory_space<vmem>>, vector<1x128xf32>
      tpu.vector_store %arg7[%c0_25, %c0_26], %26 {strides = array<i32>} : memref<1x128xf32, #tpu.memory_space<vmem>>, vector<1x128xf32>,
    } else {
    }
    %c0 = arith.constant 0 : index
    %c0_1 = arith.constant 0 : index
    %3 = vector.load %arg1[%c0, %c0_1] : memref<8x24xf32, #tpu.memory_space<vmem>>, vector<8x24xf32>
    %c0_2 = arith.constant 0 : index
    %c0_3 = arith.constant 0 : index
    %4 = vector.load %arg3[%c0_2, %c0_3] : memref<24x128xf32, #tpu.memory_space<vmem>>, vector<24x128xf32>
    %cst = arith.constant dense<0.000000e+00> : vector<8x128xf32>
    %5 = tpu.matmul %3, %4, %cst {dimension_numbers = #tpu.dot_dimension_numbers<[1], [0], [0], [1], [0, 0, 1, 1], [], []>} : vector<8x24xf32>, vector<24x128xf32>, vector<8x128xf32> -> vector<8x128xf32>
    %c0_4 = arith.constant 0 : index
    %c0_5 = arith.constant 0 : index
    %6 = vector.load %arg2[%c0_4, %c0_5] : memref<8x8xf32, #tpu.memory_space<vmem>>, vector<8x8xf32>
    %c0_6 = arith.constant 0 : index
    %c0_7 = arith.constant 0 : index
    %7 = vector.load %arg4[%c0_6, %c0_7] : memref<8x128xf32, #tpu.memory_space<vmem>>, vector<8x128xf32>
    %cst_8 = arith.constant dense<0.000000e+00> : vector<8x128xf32>
    %8 = tpu.matmul %6, %7, %cst_8 {dimension_numbers = #tpu.dot_dimension_numbers<[1], [0], [0], [1], [0, 0, 1, 1], [], []>} : vector<8x8xf32>, vector<8x128xf32>, vector<8x128xf32> -> vector<8x128xf32>
    %9 = arith.addf %5, %8 : vector<8x128xf32>
    %c0_9 = arith.constant 0 : index
    %c0_10 = arith.constant 0 : index
    %10 = vector.load %arg5[%c0_9, %c0_10] : memref<1x128xf32, #tpu.memory_space<vmem>>, vector<1x128xf32>
    %11 = vector.broadcast %10 : vector<1x128xf32> to vector<8x128xf32>
    %12 = arith.addf %9, %11 : vector<8x128xf32>
    %c0_11 = arith.constant 0 : index
    %c0_12 = arith.constant 0 : index
    %13 = vector.load %arg6[%c0_11, %c0_12] : memref<1x128xf32, #tpu.memory_space<vmem>>, vector<1x128xf32>
    %cst_13 = arith.constant dense<0.000000e+00> : vector<128xf32>
    %14 = vector.multi_reduction <add>, %12, %cst_13 [0] : vector<8x128xf32> to vector<128xf32>
    %15 = vector.shape_cast %14 : vector<128xf32> to vector<1x128xf32>
    %16 = arith.addf %13, %15 : vector<1x128xf32>
    %c0_14 = arith.constant 0 : index
    %c0_15 = arith.constant 0 : index
    %17 = vector.load %arg6[%c0_14, %c0_15] : memref<1x128xf32, #tpu.memory_space<vmem>>, vector<1x128xf32>
    tpu.vector_store %arg6[%c0_14, %c0_15], %16 {strides = array<i32>} : memref<1x128xf32, #tpu.memory_space<vmem>>, vector<1x128xf32>,
    %c0_16 = arith.constant 0 : index
    %c0_17 = arith.constant 0 : index
    %18 = vector.load %arg7[%c0_16, %c0_17] : memref<1x128xf32, #tpu.memory_space<vmem>>, vector<1x128xf32>
    %19 = arith.mulf %12, %12 : vector<8x128xf32>
    %cst_18 = arith.constant dense<0.000000e+00> : vector<128xf32>
    %20 = vector.multi_reduction <add>, %19, %cst_18 [0] : vector<8x128xf32> to vector<128xf32>
    %21 = vector.shape_cast %20 : vector<128xf32> to vector<1x128xf32>
    %22 = arith.addf %18, %21 : vector<1x128xf32>
    %c0_19 = arith.constant 0 : index
    %c0_20 = arith.constant 0 : index
    %23 = vector.load %arg7[%c0_19, %c0_20] : memref<1x128xf32, #tpu.memory_space<vmem>>, vector<1x128xf32>
    tpu.vector_store %arg7[%c0_19, %c0_20], %22 {strides = array<i32>} : memref<1x128xf32, #tpu.memory_space<vmem>>, vector<1x128xf32>,
    return
  }
  func.func @transform_0(%arg0: i32) -> (i32, i32) {
    %c0_i32 = arith.constant 0 : i32
    %c0_i32_0 = arith.constant 0 : i32
    return %arg0, %c0_i32 : i32, i32
  }
  func.func @transform_1(%arg0: i32) -> (i32, i32) {
    %c0_i32 = arith.constant 0 : i32
    %c0_i32_0 = arith.constant 0 : i32
    return %arg0, %c0_i32 : i32, i32
  }
  func.func @transform_2(%arg0: i32) -> (i32, i32) {
    %c0_i32 = arith.constant 0 : i32
    %c0_i32_0 = arith.constant 0 : i32
    %c0_i32_1 = arith.constant 0 : i32
    return %c0_i32, %c0_i32_0 : i32, i32
  }
  func.func @transform_3(%arg0: i32) -> (i32, i32) {
    %c0_i32 = arith.constant 0 : i32
    %c0_i32_0 = arith.constant 0 : i32
    %c0_i32_1 = arith.constant 0 : i32
    return %c0_i32, %c0_i32_0 : i32, i32
  }
  func.func @transform_4(%arg0: i32) -> (i32, i32) {
    %c0_i32 = arith.constant 0 : i32
    %c0_i32_0 = arith.constant 0 : i32
    %c0_i32_1 = arith.constant 0 : i32
    return %c0_i32, %c0_i32_0 : i32, i32
  }
  func.func @transform_5(%arg0: i32) -> (i32, i32) {
    %c0_i32 = arith.constant 0 : i32
    %c0_i32_0 = arith.constant 0 : i32
    %c0_i32_1 = arith.constant 0 : i32
    return %c0_i32, %c0_i32_0 : i32, i32
  }
  func.func @transform_6(%arg0: i32) -> (i32, i32) {
    %c0_i32 = arith.constant 0 : i32
    %c0_i32_0 = arith.constant 0 : i32
    %c0_i32_1 = arith.constant 0 : i32
    return %c0_i32, %c0_i32_0 : i32, i32
  }
}

</mosaic_0001>

<bundles_post_ra>
// kernel: tpu_custom_call.1
= control target key start
LH: loop header
LB: loop body
LE: loop exit
PB: predicated region body
PF: predicated region fallthrough
CT: control target
= control target key end

     0   :  { %12 = vsyncpa [#allocation3], 0  ;;  %s551_s0 = inlined_call_operand.hbm [shape: f32[8,24], index: 0, kind: input, shape index: {}]   ;;  %s552_s1 = inlined_call_operand.hbm [shape: f32[8,8], index: 1, kind: input, shape index: {}]   ;;  %s553_s2 = inlined_call_operand.hbm [shape: f32[24,128], index: 2, kind: input, shape index: {}]   ;;  %s554_s3 = inlined_call_operand.vmem [shape: f32[8,128], index: 3, kind: input, shape index: {}]   ;;  %s555_s4 = inlined_call_operand.vmem [shape: f32[1,128], index: 4, kind: input, shape index: {}]   ;;  %s556_s5 = inlined_call_operand.hbm [shape: f32[1,128], index: 5, kind: output, shape index: {0}]   ;;  %s557_s6 = inlined_call_operand.hbm [shape: f32[1,128], index: 6, kind: output, shape index: {1}]  }
   0x1   :  { %13 = vsyncpa [#allocation6], 0 }
   0x2   :  { %14 = vsyncpa [#allocation4], 0 }
   0x3   :  { %15 = vsyncpa [#allocation10], 0  ;;  %s432_s21 = smov [#allocation5]   ;;  %s433_s23 = smov [#allocation2]  }
   0x4   :  { %s32_s22 = sshll.u32 %s432_s21, 4  ;;  %s22_s24 = sshll.u32 %s433_s23, 4  ;;  %s33_s22 = int_to_ptr.vmem [resolvable:$true] %s32_s22  ;;  %s23_s24 = int_to_ptr.vmem [resolvable:$true] %s22_s24 }
   0x5   :  { %s314_s27 = scalar_lea.hbm %s552_s1, 128 }
   0x6   :  { %p315_p0 = scmp.ne.s32.totalorder %s552_s1, %s314_s27  ;;  %p318_p1 = scmp.lt.u32.totalorder %s314_s27, %s552_s1 }
   0x8   :  { %p320_p2 = pnand %p318_p1, %p315_p0 }
   0xa   :  { %323 = shalt.err (!%p320_p2)
}
   0xb   :  { %s324_s8 = scalar_lea.vmem %s33_s22, 128  ;;  %p329_p4 = scmp.lt.s32.totalorder %s33_s22, %s33_s22 }
   0xc   :  { %p325_p3 = scmp.ne.s32.totalorder %s33_s22, %s324_s8  ;;  %p330_p5 = scmp.lt.s32.totalorder %s324_s8, %s324_s8 }
   0xe   :  { %p331_p6 = por %p330_p5, %p329_p4 }
  0x10   :  { %p332_p7 = pnand %p331_p6, %p325_p3 }
  0x12   :  { %335 = shalt.err (!%p332_p7)
}
  0x13   :  { %35 = dma.hbm_to_vmem [thread:$0]  %s552_s1, 128, %s33_s22, [#allocation6]  }
  0x14   :  { %s336_s13 = scalar_lea.hbm %s551_s0, 128 }
  0x15   :  { %p337_p8 = scmp.ne.s32.totalorder %s551_s0, %s336_s13  ;;  %p340_p9 = scmp.lt.u32.totalorder %s336_s13, %s551_s0 }
  0x17   :  { %p342_p10 = pnand %p340_p9, %p337_p8 }
  0x19   :  { %345 = shalt.err (!%p342_p10)
}
  0x1a   :  { %s346_s18 = scalar_lea.vmem %s23_s24, 128  ;;  %p351_p12 = scmp.lt.s32.totalorder %s23_s24, %s23_s24 }
  0x1b   :  { %p347_p11 = scmp.ne.s32.totalorder %s23_s24, %s346_s18  ;;  %p352_p13 = scmp.lt.s32.totalorder %s346_s18, %s346_s18 }
  0x1d   :  { %p353_p0 = por %p352_p13, %p351_p12 }
  0x1f   :  { %p354_p1 = pnand %p353_p0, %p347_p11 }
  0x21   :  { %357 = shalt.err (!%p354_p1)
}
  0x22   :  { %25 = dma.hbm_to_vmem [thread:$0]  %s551_s0, 128, %s23_s24, [#allocation3]  }
  0x23   :  { %s434_s20 = smov [#allocation7]   ;;  %s358_s25 = scalar_lea.hbm %s553_s2, 384 }
  0x24   :  { %s41_s21 = sshll.u32 %s434_s20, 4  ;;  %p359_p2 = scmp.ne.s32.totalorder %s553_s2, %s358_s25  ;;  %s42_s21 = int_to_ptr.vmem [resolvable:$true] %s41_s21 }
  0x25   :  { %p362_p3 = scmp.lt.u32.totalorder %s358_s25, %s553_s2 }
  0x27   :  { %p364_p4 = pnand %p362_p3, %p359_p2 }
  0x29   :  { %367 = shalt.err (!%p364_p4)
}
  0x2a   :  { %s368_s30 = scalar_lea.vmem %s42_s21, 384  ;;  %p373_p6 = scmp.lt.s32.totalorder %s42_s21, %s42_s21 }
  0x2b   :  { %p369_p5 = scmp.ne.s32.totalorder %s42_s21, %s368_s30  ;;  %p374_p7 = scmp.lt.s32.totalorder %s368_s30, %s368_s30 }
  0x2d   :  { %p375_p8 = por %p374_p7, %p373_p6 }
  0x2f   :  { %p376_p9 = pnand %p375_p8, %p369_p5 }
  0x31   :  { %379 = shalt.err (!%p376_p9)
}
  0x32   :  { %s435_s0 = smov 128   ;;  %s436_s24 = smov 8  }
  0x33   :  { %47 = dma.hbm_to_vmem [thread:$0]  %s553_s2, 384, %s42_s21, [#allocation6], %s435_s0, %s435_s0, %s436_s24  }
  0x34   :  { %424 = dma.done.wait [#allocation3], 128  }
  0x35   :  { %425 = vsyncadd [#allocation3], 4294967168 }
  0x36   :  { %426 = dma.done.wait [#allocation6], 512  }
  0x37   :  { %427 = vsyncadd [#allocation6], 4294966784  ;;  %v437_v0 = vmov 0.0|0.0   ;;  %v438_v1 = vmov 0.0   ;;  %vm439_vm0 = vmmov 0   ;;  %vm73_vm1 = vcmask 64512  }
  0x38   :  { %301 = vmatprep.subr.bf16.mxu1 %v437_v0  ;;  %287 = vmatprep.subr.mxu0 %v438_v1  ;;  %65 = vst [vmem:[#allocation8] sm:$0x1] %v438_v1  ;;  %66 = vst [vmem:[#allocation9] sm:$0x1] %v438_v1  ;;  %v68_v2 = vld [vmem:[#allocation7] sm:$0xff]  ;;  %v69_v3 = vld [vmem:[#allocation7 + $0x8] sm:$0xff] }
  0x39   :  { %289 = vmatprep.mubr.msk.f32.mxu0 %vm439_vm0, %v438_v1  ;;  %298 = vmatprep.mubr.msk.f32.mxu1 %vm439_vm0, %v438_v1  ;;  %v72_v4 = vld [vmem:[%s554_s3] sm:$0xff]  ;;  %v302_v5 = vpack.c.bf16 %v69_v3, %v68_v2  ;;  %v71_v6 = vld [vmem:[#allocation5] sm:$0xff]  ;;  %vm147_vm2 = vcmask 195584   ;;  %s440_s3 = smov [#allocation8]  }
  0x3a   :  { %288 = vmatpush3.msra.mxu0 %v72_v4  ;;  %v70_v7 = vld [vmem:[#allocation7 + $0x10] sm:$0xff]  ;;  %s254_s12 = sshll.u32 %s440_s3, 4  ;;  %s255_s12 = int_to_ptr.vmem [resolvable:$true] %s254_s12 }
  0x3b   :  { %290 = vmatmul.mubr.msk.f32.vlgmr.msra.gmra.mrb[0].mxu0 %vm73_vm1, %v71_v6  ;;  %303 = vmatpush3.bf16.msra.mxu1 %v302_v5  ;;  %v67_v8 = vld [vmem:[#allocation2] sm:$0xff]  ;;  %s380_s14 = scalar_lea.vmem %s255_s12, 16  ;;  %s384_s15 = scalar_lea.vmem %s255_s12, 32 }
  0x3c   :  { %296 = vmatprep.subr.mxu1 %v438_v1  ;;  %v280_v12 = vld [vmem:[%s555_s4] ss:$0 sm:$0xff]  ;;  %s441_s4 = smov [#allocation9]   ;;  %p381_p10 = scmp.ne.s32.totalorder %s255_s12, %s380_s14 }
  0x3d   :  { %s264_s13 = sshll.u32 %s441_s4, 4  ;;  %p385_p11 = scmp.lt.s32.totalorder %s255_s12, %s255_s12  ;;  %s519_s13 = int_to_ptr.vmem [resolvable:$true] %s264_s13 }
  0x3e   :  { %p386_p12 = scmp.lt.s32.totalorder %s384_s15, %s380_s14 }
  0x3f   :  { %297 = vmatpush3.msra.mxu1 %v70_v7  ;;  %v229_v26 = vld [vmem:[#allocation8] sm:$0x1]  ;;  %v238_v29 = vld [vmem:[#allocation9] sm:$0x1] }
  0x40   :  { %299 = vmatmul.mubr.msk.f32.vlgmr.msra.gmra.mrb[0].mxu1 %vm147_vm2, %v67_v8  ;;  %p387_p13 = por %p386_p12, %p385_p11 }
  0x42   :  { %p388_p0 = pnand %p387_p13, %p381_p10 }
 0x10e   :  { %v143_v9 = vpop.f32.mrb[0].mxu0 }
 0x10f   :  { %v291_v10 = vpop.f32.mrb[1].mxu0 }
 0x113   :  { %v217_v11 = vpop.f32.mrb[0].mxu1 }
 0x114   :  { %v218_v13 = vadd.f32 %v217_v11, %v143_v9  ;;  %v300_v14 = vpop.f32.mrb[1].mxu1 }
 0x116   :  { %v228_v15 = vadd.f32 %v280_v12, %v218_v13 }
 0x118   :  { %v230_v16 = vrot.slane %v228_v15, 4  ;;  %v239_v17 = vmul.f32 %v228_v15, %v228_v15 }
 0x11a   :  { %v231_v18 = vadd.f32 %v230_v16, %v228_v15  ;;  %v240_v19 = vrot.slane %v239_v17, 4 }
 0x11c   :  { %v232_v20 = vrot.slane %v231_v18, 2  ;;  %v241_v21 = vadd.f32 %v240_v19, %v239_v17 }
 0x11e   :  { %v233_v22 = vadd.f32 %v232_v20, %v231_v18  ;;  %v242_v23 = vrot.slane %v241_v21, 2 }
 0x120   :  { %v234_v24 = vrot.slane %v233_v22, 1  ;;  %v243_v25 = vadd.f32 %v242_v23, %v241_v21 }
 0x122   :  { %v235_v27 = vadd.f32 %v234_v24, %v233_v22  ;;  %v244_v28 = vrot.slane %v243_v25, 1 }
 0x124   :  { %v236_v30 = vadd.f32 %v235_v27, %v229_v26  ;;  %v245_v31 = vadd.f32 %v244_v28, %v243_v25 }
 0x126   :  { %237 = vst [vmem:[#allocation8] sm:$0x1] %v236_v30  ;;  %v246_v32 = vadd.f32 %v245_v31, %v238_v29 }
 0x127   :  { %391 = shalt.err (!%p388_p0)
}
 0x128   :  { %s392_s18 = scalar_lea.hbm %s556_s5, 16 }
 0x129   :  { %p393_p1 = scmp.ne.s32.totalorder %s556_s5, %s392_s18  ;;  %p396_p2 = scmp.lt.u32.totalorder %s392_s18, %s556_s5 }
 0x12b   :  { %p398_p3 = pnand %p396_p2, %p393_p1 }
 0x12d   :  { %401 = shalt.err (!%p398_p3)
}
 0x12e   :  { %257 = dma.vmem_to_hbm [thread:$0]  %s255_s12, 16, %s556_s5, [#allocation4]   ;;  %247 = vst [vmem:[#allocation9] sm:$0x1] %v246_v32 }
 0x12f   :  { %s402_s25 = scalar_lea.vmem %s519_s13, 16  ;;  %s406_s26 = scalar_lea.vmem %s519_s13, 32 }
 0x130   :  { %p403_p4 = scmp.ne.s32.totalorder %s519_s13, %s402_s25  ;;  %p407_p5 = scmp.lt.s32.totalorder %s519_s13, %s519_s13 }
 0x131   :  { %p408_p6 = scmp.lt.s32.totalorder %s406_s26, %s402_s25 }
 0x133   :  { %p409_p7 = por %p408_p6, %p407_p5 }
 0x135   :  { %p410_p8 = pnand %p409_p7, %p403_p4 }
 0x137   :  { %413 = shalt.err (!%p410_p8)
}
 0x138   :  { %s414_s29 = scalar_lea.hbm %s557_s6, 16 }
 0x139   :  { %p415_p9 = scmp.ne.s32.totalorder %s557_s6, %s414_s29  ;;  %p418_p10 = scmp.lt.u32.totalorder %s414_s29, %s557_s6 }
 0x13b   :  { %p420_p11 = pnand %p418_p10, %p415_p9 }
 0x13d   :  { %423 = shalt.err (!%p420_p11)
}
 0x13e   :  { %267 = dma.vmem_to_hbm [thread:$0]  %s519_s13, 16, %s557_s6, [#allocation10]  }
 0x13f   :  { %428 = dma.done.wait [#allocation4], 16  }
 0x140   :  { %429 = vsyncadd [#allocation4], 4294967280 }
 0x141   :  { %430 = dma.done.wait [#allocation10], 16  }
 0x142   :  { %431 = vsyncadd [#allocation10], 4294967280 }
 0x143   :  { %274 = vsyncpa [#allocation3], 1 }
 0x144   :  { %275 = vsyncpa [#allocation6], 1 }
 0x145   :  { %276 = vsyncpa [#allocation4], 1 }
 0x146   :  { %277 = vsyncpa [#allocation10], 1 }

</bundles_post_ra>
